<compile_context>
chip_gen: v7x
topology: tpu7x:2x2x1
jax: 0.10.0
libtpu: 0.0.40
codegen_flags: <defaults>
</compile_context>

<pallas_src>
import math
import functools

import jax
import jax.numpy as jnp
from jax import lax
from jax.experimental import pallas as pl
from jax.experimental.pallas import tpu as pltpu


# ----------------------------- Pallas kernel --------------------------------

def _encoder_layer_kernel(
    x_ref,                       # (1, S, D)  input dtype
    wqkv_ref, bqkv_ref,          # (D, 3D) compute_dtype, (1, 3D) f32
    wo_ref, bo_ref,              # (D, D)  compute_dtype, (1, D) f32
    w1_ref, b1_ref,              # (D, F)  compute_dtype, (1, F) f32
    w2_ref, b2_ref,              # (F, D)  compute_dtype, (1, D) f32
    g1_ref, be1_ref,             # (1, D), (1, D)   LayerNorm 1
    g2_ref, be2_ref,             # (1, D), (1, D)   LayerNorm 2
    bias_ref,                    # (H, S, S) relative attention bias, compute_dtype
    o_ref,                       # (1, S, D)
    *,
    num_heads: int,
    head_dim: int,
    compute_dtype,
    approx_recip: bool,
):
    eps = 1e-5
    cdt = compute_dtype
    H, dk = num_heads, head_dim

    x = x_ref[0].astype(jnp.float32)            # (S, D) f32

    def layernorm(v, g, b):                     # f32 VPU math
        mu = jnp.mean(v, axis=-1, keepdims=True)
        var = jnp.mean((v - mu) ** 2, axis=-1, keepdims=True)
        return (v - mu) * lax.rsqrt(var + eps) * g + b

    # ---- self-attention block (pre-norm) ----
    xn = layernorm(x, g1_ref[...], be1_ref[...])                       # (S, D) f32

    # Single full-depth, wide-N QKV projection (one MXU matmul, f32 accumulate).
    # Weight columns are packed per head as [q | k | v]; the 1/sqrt(dk) softmax
    # scale is already folded into the q columns / q bias by the wrapper.
    qkv = jnp.dot(xn.astype(cdt), wqkv_ref[...],
                  preferred_element_type=jnp.float32) + bqkv_ref[...]  # (S, 3D) f32

    nt_dims = (((1,), (1,)), ((), ()))          # q @ k^T (contract last dims)
    ctx_heads = []
    # Per-head attention with static lane slices; every dot is a plain 2-D
    # MXU matmul (no in-kernel reshape/transpose of activations).
    # TODO(synk): key_padding_mask not supported (None in this setup).
    # TODO(synk): at large S, sequence-tile with online softmax (see header).
    for h in range(H):
        base = h * 3 * dk
        q_h = qkv[:, base:base + dk]                                   # (S, dk) f32
        k_h = qkv[:, base + dk:base + 2 * dk]
        v_h = qkv[:, base + 2 * dk:base + 3 * dk]

        scores = lax.dot_general(q_h.astype(cdt), k_h.astype(cdt), nt_dims,
                                 preferred_element_type=jnp.float32)   # (S, S) f32
        scores = scores + bias_ref[h].astype(jnp.float32)

        m = jnp.max(scores, axis=-1, keepdims=True)
        p = jnp.exp(scores - m)
        denom = jnp.sum(p, axis=-1, keepdims=True)
        attn = p * pl.reciprocal(denom, approx=approx_recip)

        # TODO(synk): on v5e (no bf16 VPU) keep the PV operands in f32 if the
        # (S,S) bf16 cast ever becomes the binding VALU slot.
        ctx_heads.append(jnp.dot(attn.astype(cdt), v_h.astype(cdt),
                                 preferred_element_type=jnp.float32))  # (S, dk)

    ctx = ctx_heads[0] if H == 1 else jnp.concatenate(ctx_heads, axis=-1)  # (S, D)

    # Full-depth output projection: one K=D matmul, no per-head reduction.
    attn_out = jnp.dot(ctx.astype(cdt), wo_ref[...],
                       preferred_element_type=jnp.float32) + bo_ref[...]

    src = x + attn_out                                                 # residual 1

    # ---- feed-forward block (pre-norm) ----
    xn2 = layernorm(src, g2_ref[...], be2_ref[...])
    h1 = jnp.dot(xn2.astype(cdt), w1_ref[...],
                 preferred_element_type=jnp.float32) + b1_ref[...]
    h1 = jnp.maximum(h1, 0.0)                                          # ReLU
    ff = jnp.dot(h1.astype(cdt), w2_ref[...],
                 preferred_element_type=jnp.float32) + b2_ref[...]

    o_ref[0] = (src + ff).astype(o_ref.dtype)                          # residual 2


# ------------------------------ wrapper --------------------------------------

def relative_transformer_encoder_layer(x, params, *, num_heads,
                                        max_relative_position=64,
                                        compute_dtype=jnp.float32):
    """x: (B, S, D) float32.  params: dict of weights (PyTorch conventions)."""
    B, S, D = x.shape
    F = params["w1"].shape[0]
    H = num_heads
    dk = D // H
    cdt = compute_dtype
    approx_recip = (cdt == jnp.bfloat16)
    scale = 1.0 / math.sqrt(dk)

    # ---- one-time weight repacking (wrapper side, plain JAX) ----
    def head_cols(w):               # torch (D_out, D_in) -> (D_in, H, dk)
        return w.T.reshape(D, H, dk)

    # (D, H, 3dk) with per-head column groups [q | k | v]; softmax scale folded
    # into the q columns and q bias.
    wqkv = jnp.concatenate([head_cols(params["wq"]) * scale,
                            head_cols(params["wk"]),
                            head_cols(params["wv"])], axis=-1)
    wqkv = wqkv.reshape(D, 3 * D).astype(cdt)                          # (D, 3D)
    bqkv = jnp.concatenate([params["bq"].reshape(H, dk) * scale,
                            params["bk"].reshape(H, dk),
                            params["bv"].reshape(H, dk)], axis=-1)
    bqkv = bqkv.reshape(1, 3 * D).astype(jnp.float32)                  # (1, 3D)

    wo_t = params["wo"].T.astype(cdt)                                  # (D, D)
    w1_t = params["w1"].T.astype(cdt)                                  # (D, F)
    w2_t = params["w2"].T.astype(cdt)                                  # (F, D)

    row = lambda p: p.reshape(1, -1).astype(jnp.float32)

    # --- T5-style relative position bias (tiny gather, done once outside) ---
    rng = jnp.arange(S)
    rel = jnp.clip(rng[:, None] - rng[None, :],
                   -max_relative_position + 1, max_relative_position - 1)
    bias_mat = params["rel_bias"][:, rel + max_relative_position - 1]
    bias_mat = bias_mat.astype(cdt)                                    # (H, S, S)

    # Grid-invariant blocks: single-buffer them (double-buffering only doubles
    # their VMEM footprint without overlapping anything).
    def invariant(shape):
        idx = lambda b: (0,) * len(shape)
        if hasattr(pl, "Buffered"):
            try:
                return pl.BlockSpec(shape, idx, pipeline_mode=pl.Buffered(1))
            except TypeError:
                pass
        return pl.BlockSpec(shape, idx)

    in_specs = [
        pl.BlockSpec((1, S, D), lambda b: (b, 0, 0)),   # x
        invariant((D, 3 * D)), invariant((1, 3 * D)),   # wqkv, bqkv
        invariant((D, D)), invariant((1, D)),           # wo_t, bo
        invariant((D, F)), invariant((1, F)),           # w1_t, b1
        invariant((F, D)), invariant((1, D)),           # w2_t, b2
        invariant((1, D)), invariant((1, D)),           # gamma1, beta1
        invariant((1, D)), invariant((1, D)),           # gamma2, beta2
        invariant((H, S, S)),                           # relative bias
    ]

    kernel = functools.partial(_encoder_layer_kernel, num_heads=H, head_dim=dk,
                               compute_dtype=cdt, approx_recip=approx_recip)

    # Scoped-VMEM budget derived from the actual part (v7x: 64 MiB physical).
    try:
        vmem_cap = int(pltpu.get_tpu_info().vmem_capacity_bytes)
    except Exception:
        vmem_cap = 64 * 1024 * 1024
    vmem_limit = int(min(vmem_cap * 5 // 8, 64 * 1024 * 1024))

    return pl.pallas_call(
        kernel,
        out_shape=jax.ShapeDtypeStruct((B, S, D), x.dtype),
        grid=(B,),
        in_specs=in_specs,
        out_specs=pl.BlockSpec((1, S, D), lambda b: (b, 0, 0)),
        compiler_params=pltpu.CompilerParams(
            dimension_semantics=("parallel",),
            vmem_limit_bytes=vmem_limit,
        ),
    )(
        x,
        wqkv, bqkv,
        wo_t, row(params["bo"]),
        w1_t, row(params["b1"]),
        w2_t, row(params["b2"]),
        row(params["gamma1"]), row(params["beta1"]),
        row(params["gamma2"]), row(params["beta2"]),
        bias_mat,
    )


# ------------------------ pure-JAX reference (for check) ---------------------

def _reference(x, params, *, num_heads, max_relative_position=64):
    B, S, D = x.shape
    dk = D // num_heads
    eps = 1e-5

    def ln(v, g, b):
        mu = v.mean(-1, keepdims=True)
        var = ((v - mu) ** 2).mean(-1, keepdims=True)
        return (v - mu) / jnp.sqrt(var + eps) * g + b

    xn = ln(x, params["gamma1"], params["beta1"])
    q = xn @ params["wq"].T + params["bq"]
    k = xn @ params["wk"].T + params["bk"]
    v = xn @ params["wv"].T + params["bv"]
    q = q.reshape(B, S, num_heads, dk).transpose(0, 2, 1, 3)
    k = k.reshape(B, S, num_heads, dk).transpose(0, 2, 1, 3)
    v = v.reshape(B, S, num_heads, dk).transpose(0, 2, 1, 3)
    scores = jnp.einsum("bhqd,bhkd->bhqk", q, k) / math.sqrt(dk)
    rng = jnp.arange(S)
    rel = jnp.clip(rng[:, None] - rng[None, :],
                   -max_relative_position + 1, max_relative_position - 1)
    bias = params["rel_bias"][:, rel + max_relative_position - 1]
    scores = scores + bias[None]
    attn = jax.nn.softmax(scores, axis=-1)
    out = jnp.einsum("bhqk,bhkd->bhqd", attn, v)
    out = out.transpose(0, 2, 1, 3).reshape(B, S, D)
    out = out @ params["wo"].T + params["bo"]
    src = x + out
    xn2 = ln(src, params["gamma2"], params["beta2"])
    ff = jnp.maximum(xn2 @ params["w1"].T + params["b1"], 0.0) @ params["w2"].T + params["b2"]
    return src + ff


# ---------------------------------- main --------------------------------------

if __name__ == "__main__":
    B, S, D, H, F = 2, 8, 32, 4, 64
    MAX_REL = 64

    key = jax.random.PRNGKey(0)
    keys = jax.random.split(key, 16)

    def lin_w(k, out_f, in_f):
        bound = 1.0 / math.sqrt(in_f)
        return jax.random.uniform(k, (out_f, in_f), jnp.float32, -bound, bound)

    def lin_b(k, out_f, in_f):
        bound = 1.0 / math.sqrt(in_f)
        return jax.random.uniform(k, (out_f,), jnp.float32, -bound, bound)

    params = {
        "wq": lin_w(keys[0], D, D), "bq": lin_b(keys[1], D, D),
        "wk": lin_w(keys[2], D, D), "bk": lin_b(keys[3], D, D),
        "wv": lin_w(keys[4], D, D), "bv": lin_b(keys[5], D, D),
        "wo": lin_w(keys[6], D, D), "bo": lin_b(keys[7], D, D),
        "w1": lin_w(keys[8], F, D), "b1": lin_b(keys[9], F, D),
        "w2": lin_w(keys[10], D, F), "b2": lin_b(keys[11], D, F),
        "gamma1": jnp.ones((D,), jnp.float32), "beta1": jnp.zeros((D,), jnp.float32),
        "gamma2": jnp.ones((D,), jnp.float32), "beta2": jnp.zeros((D,), jnp.float32),
        # xavier_uniform for the (H, 2*max-1) relative bias table
        "rel_bias": jax.random.uniform(
            keys[12], (H, 2 * MAX_REL - 1), jnp.float32,
            -math.sqrt(6.0 / (H + 2 * MAX_REL - 1)),
            math.sqrt(6.0 / (H + 2 * MAX_REL - 1))),
    }

    x = jax.random.normal(keys[13], (B, S, D), jnp.float32)

    ref = _reference(x, params, num_heads=H, max_relative_position=MAX_REL)

    # ---- exact f32 path: tight check against pure-JAX reference ----
    out = relative_transformer_encoder_layer(
        x, params, num_heads=H, max_relative_position=MAX_REL,
        compute_dtype=jnp.float32)
    out = jax.block_until_ready(out)
    assert out.shape == (B, S, D)
    assert jnp.allclose(out, ref, atol=1e-4, rtol=1e-4), (
        float(jnp.max(jnp.abs(out - ref))))

    # ---- bf16-MXU fast path: loose check (f32 accumulation, f32 softmax) ----
    out_bf16 = relative_transformer_encoder_layer(
        x, params, num_heads=H, max_relative_position=MAX_REL,
        compute_dtype=jnp.bfloat16)
    out_bf16 = jax.block_until_ready(out_bf16)
    assert jnp.allclose(out_bf16, ref, atol=1e-1, rtol=1e-1), (
        float(jnp.max(jnp.abs(out_bf16 - ref))))

    print("KERNEL_OK")
</pallas_src>

<mosaic_0001>
module attributes {stable_mosaic.version = 11 : i64} {
  func.func @_encoder_layer_kernel(%arg0: i32, %arg1: memref<1x8x32xf32, #tpu.memory_space<vmem>>, %arg2: memref<32x96xf32, #tpu.memory_space<vmem>>, %arg3: memref<1x96xf32, #tpu.memory_space<vmem>>, %arg4: memref<32x32xf32, #tpu.memory_space<vmem>>, %arg5: memref<1x32xf32, #tpu.memory_space<vmem>>, %arg6: memref<32x64xf32, #tpu.memory_space<vmem>>, %arg7: memref<1x64xf32, #tpu.memory_space<vmem>>, %arg8: memref<64x32xf32, #tpu.memory_space<vmem>>, %arg9: memref<1x32xf32, #tpu.memory_space<vmem>>, %arg10: memref<1x32xf32, #tpu.memory_space<vmem>>, %arg11: memref<1x32xf32, #tpu.memory_space<vmem>>, %arg12: memref<1x32xf32, #tpu.memory_space<vmem>>, %arg13: memref<1x32xf32, #tpu.memory_space<vmem>>, %arg14: memref<4x8x8xf32, #tpu.memory_space<vmem>>, %arg15: memref<1x8x32xf32, #tpu.memory_space<vmem>>) attributes {dimension_semantics = [#tpu.dimension_semantics<parallel>], iteration_bounds = array<i64: 2>, scalar_prefetch = 0 : i64, scratch_operands = 0 : i64, tpu.core_type = #tpu.core_type<tc>, window_params = [{transform_indices = @transform_0, window_bounds = array<i64: 1, 8, 32>}, {pipeline_mode = #tpu.pipeline_mode<synchronous>, transform_indices = @transform_1, window_bounds = array<i64: 32, 96>}, {pipeline_mode = #tpu.pipeline_mode<synchronous>, transform_indices = @transform_2, window_bounds = array<i64: 1, 96>}, {pipeline_mode = #tpu.pipeline_mode<synchronous>, transform_indices = @transform_3, window_bounds = array<i64: 32, 32>}, {pipeline_mode = #tpu.pipeline_mode<synchronous>, transform_indices = @transform_4, window_bounds = array<i64: 1, 32>}, {pipeline_mode = #tpu.pipeline_mode<synchronous>, transform_indices = @transform_5, window_bounds = array<i64: 32, 64>}, {pipeline_mode = #tpu.pipeline_mode<synchronous>, transform_indices = @transform_6, window_bounds = array<i64: 1, 64>}, {pipeline_mode = #tpu.pipeline_mode<synchronous>, transform_indices = @transform_7, window_bounds = array<i64: 64, 32>}, {pipeline_mode = #tpu.pipeline_mode<synchronous>, transform_indices = @transform_8, window_bounds = array<i64: 1, 32>}, {pipeline_mode = #tpu.pipeline_mode<synchronous>, transform_indices = @transform_9, window_bounds = array<i64: 1, 32>}, {pipeline_mode = #tpu.pipeline_mode<synchronous>, transform_indices = @transform_10, window_bounds = array<i64: 1, 32>}, {pipeline_mode = #tpu.pipeline_mode<synchronous>, transform_indices = @transform_11, window_bounds = array<i64: 1, 32>}, {pipeline_mode = #tpu.pipeline_mode<synchronous>, transform_indices = @transform_12, window_bounds = array<i64: 1, 32>}, {pipeline_mode = #tpu.pipeline_mode<synchronous>, transform_indices = @transform_13, window_bounds = array<i64: 4, 8, 8>}, {transform_indices = @transform_14, window_bounds = array<i64: 1, 8, 32>}]} {
    %c0 = arith.constant 0 : index
    %c0_0 = arith.constant 0 : index
    %c0_1 = arith.constant 0 : index
    %0 = vector.load %arg1[%c0, %c0_0, %c0_1] : memref<1x8x32xf32, #tpu.memory_space<vmem>>, vector<1x8x32xf32>
    %1 = vector.shape_cast %0 : vector<1x8x32xf32> to vector<8x32xf32>
    %c0_2 = arith.constant 0 : index
    %c0_3 = arith.constant 0 : index
    %2 = vector.load %arg10[%c0_2, %c0_3] : memref<1x32xf32, #tpu.memory_space<vmem>>, vector<1x32xf32>
    %c0_4 = arith.constant 0 : index
    %c0_5 = arith.constant 0 : index
    %3 = vector.load %arg11[%c0_4, %c0_5] : memref<1x32xf32, #tpu.memory_space<vmem>>, vector<1x32xf32>
    %cst = arith.constant dense<0.000000e+00> : vector<8xf32>
    %4 = vector.multi_reduction <add>, %1, %cst [1] : vector<8x32xf32> to vector<8xf32>
    %5 = vector.shape_cast %4 : vector<8xf32> to vector<8x1xf32>
    %cst_6 = arith.constant 3.200000e+01 : f32
    %6 = vector.broadcast %cst_6 : f32 to vector<8x1xf32>
    %7 = arith.divf %5, %6 : vector<8x1xf32>
    %8 = vector.broadcast %7 : vector<8x1xf32> to vector<8x32xf32>
    %9 = arith.subf %1, %8 : vector<8x32xf32>
    %10 = arith.mulf %9, %9 : vector<8x32xf32>
    %cst_7 = arith.constant dense<0.000000e+00> : vector<8xf32>
    %11 = vector.multi_reduction <add>, %10, %cst_7 [1] : vector<8x32xf32> to vector<8xf32>
    %12 = vector.shape_cast %11 : vector<8xf32> to vector<8x1xf32>
    %cst_8 = arith.constant 3.200000e+01 : f32
    %13 = vector.broadcast %cst_8 : f32 to vector<8x1xf32>
    %14 = arith.divf %12, %13 : vector<8x1xf32>
    %15 = vector.broadcast %7 : vector<8x1xf32> to vector<8x32xf32>
    %16 = arith.subf %1, %15 : vector<8x32xf32>
    %cst_9 = arith.constant 9.99999974E-6 : f32
    %17 = vector.broadcast %cst_9 : f32 to vector<8x1xf32>
    %18 = arith.addf %14, %17 : vector<8x1xf32>
    %19 = math.rsqrt %18 : vector<8x1xf32>
    %20 = vector.broadcast %19 : vector<8x1xf32> to vector<8x32xf32>
    %21 = arith.mulf %16, %20 : vector<8x32xf32>
    %22 = vector.broadcast %2 : vector<1x32xf32> to vector<8x32xf32>
    %23 = arith.mulf %21, %22 : vector<8x32xf32>
    %24 = vector.broadcast %3 : vector<1x32xf32> to vector<8x32xf32>
    %25 = arith.addf %23, %24 : vector<8x32xf32>
    %c0_10 = arith.constant 0 : index
    %c0_11 = arith.constant 0 : index
    %26 = vector.load %arg2[%c0_10, %c0_11] : memref<32x96xf32, #tpu.memory_space<vmem>>, vector<32x96xf32>
    %cst_12 = arith.constant dense<0.000000e+00> : vector<8x96xf32>
    %27 = tpu.matmul %25, %26, %cst_12 {dimension_numbers = #tpu.dot_dimension_numbers<[1], [0], [0], [1], [0, 0, 1, 1], [], []>} : vector<8x32xf32>, vector<32x96xf32>, vector<8x96xf32> -> vector<8x96xf32>
    %c0_13 = arith.constant 0 : index
    %c0_14 = arith.constant 0 : index
    %28 = vector.load %arg3[%c0_13, %c0_14] : memref<1x96xf32, #tpu.memory_space<vmem>>, vector<1x96xf32>
    %29 = vector.broadcast %28 : vector<1x96xf32> to vector<8x96xf32>
    %30 = arith.addf %27, %29 : vector<8x96xf32>
    %31 = vector.extract_strided_slice %30 {offsets = [0, 0], sizes = [8, 8], strides = [1, 1]} : vector<8x96xf32> to vector<8x8xf32>
    %32 = vector.extract_strided_slice %30 {offsets = [0, 8], sizes = [8, 8], strides = [1, 1]} : vector<8x96xf32> to vector<8x8xf32>
    %33 = vector.extract_strided_slice %30 {offsets = [0, 16], sizes = [8, 8], strides = [1, 1]} : vector<8x96xf32> to vector<8x8xf32>
    %cst_15 = arith.constant dense<0.000000e+00> : vector<8x8xf32>
    %34 = tpu.matmul %31, %32, %cst_15 {dimension_numbers = #tpu.dot_dimension_numbers<[1], [1], [0], [0], [0, 0, 1, 0], [], []>} : vector<8x8xf32>, vector<8x8xf32>, vector<8x8xf32> -> vector<8x8xf32>
    %c0_16 = arith.constant 0 : index
    %c0_17 = arith.constant 0 : index
    %c0_18 = arith.constant 0 : index
    %35 = vector.load %arg14[%c0_16, %c0_17, %c0_18] : memref<4x8x8xf32, #tpu.memory_space<vmem>>, vector<1x8x8xf32>
    %36 = vector.shape_cast %35 : vector<1x8x8xf32> to vector<8x8xf32>
    %37 = arith.addf %34, %36 : vector<8x8xf32>
    %cst_19 = arith.constant dense<0xFF800000> : vector<8xf32>
    %38 = vector.multi_reduction <maximumf>, %37, %cst_19 [1] : vector<8x8xf32> to vector<8xf32>
    %39 = vector.shape_cast %38 : vector<8xf32> to vector<8x1xf32>
    %40 = vector.broadcast %39 : vector<8x1xf32> to vector<8x8xf32>
    %41 = arith.subf %37, %40 : vector<8x8xf32>
    %42 = math.exp %41 : vector<8x8xf32>
    %cst_20 = arith.constant dense<0.000000e+00> : vector<8xf32>
    %43 = vector.multi_reduction <add>, %42, %cst_20 [1] : vector<8x8xf32> to vector<8xf32>
    %44 = vector.shape_cast %43 : vector<8xf32> to vector<8x1xf32>
    %45 = tpu.reciprocal %44 : vector<8x1xf32> -> vector<8x1xf32>
    %46 = vector.broadcast %45 : vector<8x1xf32> to vector<8x8xf32>
    %47 = arith.mulf %42, %46 : vector<8x8xf32>
    %cst_21 = arith.constant dense<0.000000e+00> : vector<8x8xf32>
    %48 = tpu.matmul %47, %33, %cst_21 {dimension_numbers = #tpu.dot_dimension_numbers<[1], [0], [0], [1], [0, 0, 1, 1], [], []>} : vector<8x8xf32>, vector<8x8xf32>, vector<8x8xf32> -> vector<8x8xf32>
    %49 = vector.extract_strided_slice %30 {offsets = [0, 24], sizes = [8, 8], strides = [1, 1]} : vector<8x96xf32> to vector<8x8xf32>
    %50 = vector.extract_strided_slice %30 {offsets = [0, 32], sizes = [8, 8], strides = [1, 1]} : vector<8x96xf32> to vector<8x8xf32>
    %51 = vector.extract_strided_slice %30 {offsets = [0, 40], sizes = [8, 8], strides = [1, 1]} : vector<8x96xf32> to vector<8x8xf32>
    %cst_22 = arith.constant dense<0.000000e+00> : vector<8x8xf32>
    %52 = tpu.matmul %49, %50, %cst_22 {dimension_numbers = #tpu.dot_dimension_numbers<[1], [1], [0], [0], [0, 0, 1, 0], [], []>} : vector<8x8xf32>, vector<8x8xf32>, vector<8x8xf32> -> vector<8x8xf32>
    %c1 = arith.constant 1 : index
    %c0_23 = arith.constant 0 : index
    %c0_24 = arith.constant 0 : index
    %53 = vector.load %arg14[%c1, %c0_23, %c0_24] : memref<4x8x8xf32, #tpu.memory_space<vmem>>, vector<1x8x8xf32>
    %54 = vector.shape_cast %53 : vector<1x8x8xf32> to vector<8x8xf32>
    %55 = arith.addf %52, %54 : vector<8x8xf32>
    %cst_25 = arith.constant dense<0xFF800000> : vector<8xf32>
    %56 = vector.multi_reduction <maximumf>, %55, %cst_25 [1] : vector<8x8xf32> to vector<8xf32>
    %57 = vector.shape_cast %56 : vector<8xf32> to vector<8x1xf32>
    %58 = vector.broadcast %57 : vector<8x1xf32> to vector<8x8xf32>
    %59 = arith.subf %55, %58 : vector<8x8xf32>
    %60 = math.exp %59 : vector<8x8xf32>
    %cst_26 = arith.constant dense<0.000000e+00> : vector<8xf32>
    %61 = vector.multi_reduction <add>, %60, %cst_26 [1] : vector<8x8xf32> to vector<8xf32>
    %62 = vector.shape_cast %61 : vector<8xf32> to vector<8x1xf32>
    %63 = tpu.reciprocal %62 : vector<8x1xf32> -> vector<8x1xf32>
    %64 = vector.broadcast %63 : vector<8x1xf32> to vector<8x8xf32>
    %65 = arith.mulf %60, %64 : vector<8x8xf32>
    %cst_27 = arith.constant dense<0.000000e+00> : vector<8x8xf32>
    %66 = tpu.matmul %65, %51, %cst_27 {dimension_numbers = #tpu.dot_dimension_numbers<[1], [0], [0], [1], [0, 0, 1, 1], [], []>} : vector<8x8xf32>, vector<8x8xf32>, vector<8x8xf32> -> vector<8x8xf32>
    %67 = vector.extract_strided_slice %30 {offsets = [0, 48], sizes = [8, 8], strides = [1, 1]} : vector<8x96xf32> to vector<8x8xf32>
    %68 = vector.extract_strided_slice %30 {offsets = [0, 56], sizes = [8, 8], strides = [1, 1]} : vector<8x96xf32> to vector<8x8xf32>
    %69 = vector.extract_strided_slice %30 {offsets = [0, 64], sizes = [8, 8], strides = [1, 1]} : vector<8x96xf32> to vector<8x8xf32>
    %cst_28 = arith.constant dense<0.000000e+00> : vector<8x8xf32>
    %70 = tpu.matmul %67, %68, %cst_28 {dimension_numbers = #tpu.dot_dimension_numbers<[1], [1], [0], [0], [0, 0, 1, 0], [], []>} : vector<8x8xf32>, vector<8x8xf32>, vector<8x8xf32> -> vector<8x8xf32>
    %c2 = arith.constant 2 : index
    %c0_29 = arith.constant 0 : index
    %c0_30 = arith.constant 0 : index
    %71 = vector.load %arg14[%c2, %c0_29, %c0_30] : memref<4x8x8xf32, #tpu.memory_space<vmem>>, vector<1x8x8xf32>
    %72 = vector.shape_cast %71 : vector<1x8x8xf32> to vector<8x8xf32>
    %73 = arith.addf %70, %72 : vector<8x8xf32>
    %cst_31 = arith.constant dense<0xFF800000> : vector<8xf32>
    %74 = vector.multi_reduction <maximumf>, %73, %cst_31 [1] : vector<8x8xf32> to vector<8xf32>
    %75 = vector.shape_cast %74 : vector<8xf32> to vector<8x1xf32>
    %76 = vector.broadcast %75 : vector<8x1xf32> to vector<8x8xf32>
    %77 = arith.subf %73, %76 : vector<8x8xf32>
    %78 = math.exp %77 : vector<8x8xf32>
    %cst_32 = arith.constant dense<0.000000e+00> : vector<8xf32>
    %79 = vector.multi_reduction <add>, %78, %cst_32 [1] : vector<8x8xf32> to vector<8xf32>
    %80 = vector.shape_cast %79 : vector<8xf32> to vector<8x1xf32>
    %81 = tpu.reciprocal %80 : vector<8x1xf32> -> vector<8x1xf32>
    %82 = vector.broadcast %81 : vector<8x1xf32> to vector<8x8xf32>
    %83 = arith.mulf %78, %82 : vector<8x8xf32>
    %cst_33 = arith.constant dense<0.000000e+00> : vector<8x8xf32>
    %84 = tpu.matmul %83, %69, %cst_33 {dimension_numbers = #tpu.dot_dimension_numbers<[1], [0], [0], [1], [0, 0, 1, 1], [], []>} : vector<8x8xf32>, vector<8x8xf32>, vector<8x8xf32> -> vector<8x8xf32>
    %85 = vector.extract_strided_slice %30 {offsets = [0, 72], sizes = [8, 8], strides = [1, 1]} : vector<8x96xf32> to vector<8x8xf32>
    %86 = vector.extract_strided_slice %30 {offsets = [0, 80], sizes = [8, 8], strides = [1, 1]} : vector<8x96xf32> to vector<8x8xf32>
    %87 = vector.extract_strided_slice %30 {offsets = [0, 88], sizes = [8, 8], strides = [1, 1]} : vector<8x96xf32> to vector<8x8xf32>
    %cst_34 = arith.constant dense<0.000000e+00> : vector<8x8xf32>
    %88 = tpu.matmul %85, %86, %cst_34 {dimension_numbers = #tpu.dot_dimension_numbers<[1], [1], [0], [0], [0, 0, 1, 0], [], []>} : vector<8x8xf32>, vector<8x8xf32>, vector<8x8xf32> -> vector<8x8xf32>
    %c3 = arith.constant 3 : index
    %c0_35 = arith.constant 0 : index
    %c0_36 = arith.constant 0 : index
    %89 = vector.load %arg14[%c3, %c0_35, %c0_36] : memref<4x8x8xf32, #tpu.memory_space<vmem>>, vector<1x8x8xf32>
    %90 = vector.shape_cast %89 : vector<1x8x8xf32> to vector<8x8xf32>
    %91 = arith.addf %88, %90 : vector<8x8xf32>
    %cst_37 = arith.constant dense<0xFF800000> : vector<8xf32>
    %92 = vector.multi_reduction <maximumf>, %91, %cst_37 [1] : vector<8x8xf32> to vector<8xf32>
    %93 = vector.shape_cast %92 : vector<8xf32> to vector<8x1xf32>
    %94 = vector.broadcast %93 : vector<8x1xf32> to vector<8x8xf32>
    %95 = arith.subf %91, %94 : vector<8x8xf32>
    %96 = math.exp %95 : vector<8x8xf32>
    %cst_38 = arith.constant dense<0.000000e+00> : vector<8xf32>
    %97 = vector.multi_reduction <add>, %96, %cst_38 [1] : vector<8x8xf32> to vector<8xf32>
    %98 = vector.shape_cast %97 : vector<8xf32> to vector<8x1xf32>
    %99 = tpu.reciprocal %98 : vector<8x1xf32> -> vector<8x1xf32>
    %100 = vector.broadcast %99 : vector<8x1xf32> to vector<8x8xf32>
    %101 = arith.mulf %96, %100 : vector<8x8xf32>
    %cst_39 = arith.constant dense<0.000000e+00> : vector<8x8xf32>
    %102 = tpu.matmul %101, %87, %cst_39 {dimension_numbers = #tpu.dot_dimension_numbers<[1], [0], [0], [1], [0, 0, 1, 1], [], []>} : vector<8x8xf32>, vector<8x8xf32>, vector<8x8xf32> -> vector<8x8xf32>
    %103 = tpu.concatenate %48, %66, %84, %102 in 1 : vector<8x8xf32>, vector<8x8xf32>, vector<8x8xf32>, vector<8x8xf32> -> vector<8x32xf32>
    %c0_40 = arith.constant 0 : index
    %c0_41 = arith.constant 0 : index
    %104 = vector.load %arg4[%c0_40, %c0_41] : memref<32x32xf32, #tpu.memory_space<vmem>>, vector<32x32xf32>
    %cst_42 = arith.constant dense<0.000000e+00> : vector<8x32xf32>
    %105 = tpu.matmul %103, %104, %cst_42 {dimension_numbers = #tpu.dot_dimension_numbers<[1], [0], [0], [1], [0, 0, 1, 1], [], []>} : vector<8x32xf32>, vector<32x32xf32>, vector<8x32xf32> -> vector<8x32xf32>
    %c0_43 = arith.constant 0 : index
    %c0_44 = arith.constant 0 : index
    %106 = vector.load %arg5[%c0_43, %c0_44] : memref<1x32xf32, #tpu.memory_space<vmem>>, vector<1x32xf32>
    %107 = vector.broadcast %106 : vector<1x32xf32> to vector<8x32xf32>
    %108 = arith.addf %105, %107 : vector<8x32xf32>
    %109 = arith.addf %1, %108 : vector<8x32xf32>
    %c0_45 = arith.constant 0 : index
    %c0_46 = arith.constant 0 : index
    %110 = vector.load %arg12[%c0_45, %c0_46] : memref<1x32xf32, #tpu.memory_space<vmem>>, vector<1x32xf32>
    %c0_47 = arith.constant 0 : index
    %c0_48 = arith.constant 0 : index
    %111 = vector.load %arg13[%c0_47, %c0_48] : memref<1x32xf32, #tpu.memory_space<vmem>>, vector<1x32xf32>
    %cst_49 = arith.constant dense<0.000000e+00> : vector<8xf32>
    %112 = vector.multi_reduction <add>, %109, %cst_49 [1] : vector<8x32xf32> to vector<8xf32>
    %113 = vector.shape_cast %112 : vector<8xf32> to vector<8x1xf32>
    %cst_50 = arith.constant 3.200000e+01 : f32
    %114 = vector.broadcast %cst_50 : f32 to vector<8x1xf32>
    %115 = arith.divf %113, %114 : vector<8x1xf32>
    %116 = vector.broadcast %115 : vector<8x1xf32> to vector<8x32xf32>
    %117 = arith.subf %109, %116 : vector<8x32xf32>
    %118 = arith.mulf %117, %117 : vector<8x32xf32>
    %cst_51 = arith.constant dense<0.000000e+00> : vector<8xf32>
    %119 = vector.multi_reduction <add>, %118, %cst_51 [1] : vector<8x32xf32> to vector<8xf32>
    %120 = vector.shape_cast %119 : vector<8xf32> to vector<8x1xf32>
    %cst_52 = arith.constant 3.200000e+01 : f32
    %121 = vector.broadcast %cst_52 : f32 to vector<8x1xf32>
    %122 = arith.divf %120, %121 : vector<8x1xf32>
    %123 = vector.broadcast %115 : vector<8x1xf32> to vector<8x32xf32>
    %124 = arith.subf %109, %123 : vector<8x32xf32>
    %cst_53 = arith.constant 9.99999974E-6 : f32
    %125 = vector.broadcast %cst_53 : f32 to vector<8x1xf32>
    %126 = arith.addf %122, %125 : vector<8x1xf32>
    %127 = math.rsqrt %126 : vector<8x1xf32>
    %128 = vector.broadcast %127 : vector<8x1xf32> to vector<8x32xf32>
    %129 = arith.mulf %124, %128 : vector<8x32xf32>
    %130 = vector.broadcast %110 : vector<1x32xf32> to vector<8x32xf32>
    %131 = arith.mulf %129, %130 : vector<8x32xf32>
    %132 = vector.broadcast %111 : vector<1x32xf32> to vector<8x32xf32>
    %133 = arith.addf %131, %132 : vector<8x32xf32>
    %c0_54 = arith.constant 0 : index
    %c0_55 = arith.constant 0 : index
    %134 = vector.load %arg6[%c0_54, %c0_55] : memref<32x64xf32, #tpu.memory_space<vmem>>, vector<32x64xf32>
    %cst_56 = arith.constant dense<0.000000e+00> : vector<8x64xf32>
    %135 = tpu.matmul %133, %134, %cst_56 {dimension_numbers = #tpu.dot_dimension_numbers<[1], [0], [0], [1], [0, 0, 1, 1], [], []>} : vector<8x32xf32>, vector<32x64xf32>, vector<8x64xf32> -> vector<8x64xf32>
    %c0_57 = arith.constant 0 : index
    %c0_58 = arith.constant 0 : index
    %136 = vector.load %arg7[%c0_57, %c0_58] : memref<1x64xf32, #tpu.memory_space<vmem>>, vector<1x64xf32>
    %137 = vector.broadcast %136 : vector<1x64xf32> to vector<8x64xf32>
    %138 = arith.addf %135, %137 : vector<8x64xf32>
    %cst_59 = arith.constant 0.000000e+00 : f32
    %139 = vector.broadcast %cst_59 : f32 to vector<8x64xf32>
    %140 = arith.maximumf %138, %139 : vector<8x64xf32>
    %c0_60 = arith.constant 0 : index
    %c0_61 = arith.constant 0 : index
    %141 = vector.load %arg8[%c0_60, %c0_61] : memref<64x32xf32, #tpu.memory_space<vmem>>, vector<64x32xf32>
    %cst_62 = arith.constant dense<0.000000e+00> : vector<8x32xf32>
    %142 = tpu.matmul %140, %141, %cst_62 {dimension_numbers = #tpu.dot_dimension_numbers<[1], [0], [0], [1], [0, 0, 1, 1], [], []>} : vector<8x64xf32>, vector<64x32xf32>, vector<8x32xf32> -> vector<8x32xf32>
    %c0_63 = arith.constant 0 : index
    %c0_64 = arith.constant 0 : index
    %143 = vector.load %arg9[%c0_63, %c0_64] : memref<1x32xf32, #tpu.memory_space<vmem>>, vector<1x32xf32>
    %144 = vector.broadcast %143 : vector<1x32xf32> to vector<8x32xf32>
    %145 = arith.addf %142, %144 : vector<8x32xf32>
    %146 = arith.addf %109, %145 : vector<8x32xf32>
    %c0_65 = arith.constant 0 : index
    %c0_66 = arith.constant 0 : index
    %c0_67 = arith.constant 0 : index
    %147 = vector.load %arg15[%c0_65, %c0_66, %c0_67] : memref<1x8x32xf32, #tpu.memory_space<vmem>>, vector<1x8x32xf32>
    %148 = vector.shape_cast %147 : vector<1x8x32xf32> to vector<8x32xf32>
    %149 = vector.shape_cast %146 : vector<8x32xf32> to vector<1x8x32xf32>
    tpu.vector_store %arg15[%c0_65, %c0_66, %c0_67], %149 {strides = array<i32>} : memref<1x8x32xf32, #tpu.memory_space<vmem>>, vector<1x8x32xf32>,
    return
  }
  func.func @transform_0(%arg0: i32) -> (i32, i32, i32) {
    %c0_i32 = arith.constant 0 : i32
    %c0_i32_0 = arith.constant 0 : i32
    %c0_i32_1 = arith.constant 0 : i32
    return %arg0, %c0_i32, %c0_i32_0 : i32, i32, i32
  }
  func.func @transform_1(%arg0: i32) -> (i32, i32) {
    %c0_i32 = arith.constant 0 : i32
    %c0_i32_0 = arith.constant 0 : i32
    %c0_i32_1 = arith.constant 0 : i32
    return %c0_i32, %c0_i32_0 : i32, i32
  }
  func.func @transform_2(%arg0: i32) -> (i32, i32) {
    %c0_i32 = arith.constant 0 : i32
    %c0_i32_0 = arith.constant 0 : i32
    %c0_i32_1 = arith.constant 0 : i32
    return %c0_i32, %c0_i32_0 : i32, i32
  }
  func.func @transform_3(%arg0: i32) -> (i32, i32) {
    %c0_i32 = arith.constant 0 : i32
    %c0_i32_0 = arith.constant 0 : i32
    %c0_i32_1 = arith.constant 0 : i32
    return %c0_i32, %c0_i32_0 : i32, i32
  }
  func.func @transform_4(%arg0: i32) -> (i32, i32) {
    %c0_i32 = arith.constant 0 : i32
    %c0_i32_0 = arith.constant 0 : i32
    %c0_i32_1 = arith.constant 0 : i32
    return %c0_i32, %c0_i32_0 : i32, i32
  }
  func.func @transform_5(%arg0: i32) -> (i32, i32) {
    %c0_i32 = arith.constant 0 : i32
    %c0_i32_0 = arith.constant 0 : i32
    %c0_i32_1 = arith.constant 0 : i32
    return %c0_i32, %c0_i32_0 : i32, i32
  }
  func.func @transform_6(%arg0: i32) -> (i32, i32) {
    %c0_i32 = arith.constant 0 : i32
    %c0_i32_0 = arith.constant 0 : i32
    %c0_i32_1 = arith.constant 0 : i32
    return %c0_i32, %c0_i32_0 : i32, i32
  }
  func.func @transform_7(%arg0: i32) -> (i32, i32) {
    %c0_i32 = arith.constant 0 : i32
    %c0_i32_0 = arith.constant 0 : i32
    %c0_i32_1 = arith.constant 0 : i32
    return %c0_i32, %c0_i32_0 : i32, i32
  }
  func.func @transform_8(%arg0: i32) -> (i32, i32) {
    %c0_i32 = arith.constant 0 : i32
    %c0_i32_0 = arith.constant 0 : i32
    %c0_i32_1 = arith.constant 0 : i32
    return %c0_i32, %c0_i32_0 : i32, i32
  }
  func.func @transform_9(%arg0: i32) -> (i32, i32) {
    %c0_i32 = arith.constant 0 : i32
    %c0_i32_0 = arith.constant 0 : i32
    %c0_i32_1 = arith.constant 0 : i32
    return %c0_i32, %c0_i32_0 : i32, i32
  }
  func.func @transform_10(%arg0: i32) -> (i32, i32) {
    %c0_i32 = arith.constant 0 : i32
    %c0_i32_0 = arith.constant 0 : i32
    %c0_i32_1 = arith.constant 0 : i32
    return %c0_i32, %c0_i32_0 : i32, i32
  }
  func.func @transform_11(%arg0: i32) -> (i32, i32) {
    %c0_i32 = arith.constant 0 : i32
    %c0_i32_0 = arith.constant 0 : i32
    %c0_i32_1 = arith.constant 0 : i32
    return %c0_i32, %c0_i32_0 : i32, i32
  }
  func.func @transform_12(%arg0: i32) -> (i32, i32) {
    %c0_i32 = arith.constant 0 : i32
    %c0_i32_0 = arith.constant 0 : i32
    %c0_i32_1 = arith.constant 0 : i32
    return %c0_i32, %c0_i32_0 : i32, i32
  }
  func.func @transform_13(%arg0: i32) -> (i32, i32, i32) {
    %c0_i32 = arith.constant 0 : i32
    %c0_i32_0 = arith.constant 0 : i32
    %c0_i32_1 = arith.constant 0 : i32
    %c0_i32_2 = arith.constant 0 : i32
    return %c0_i32, %c0_i32_0, %c0_i32_1 : i32, i32, i32
  }
  func.func @transform_14(%arg0: i32) -> (i32, i32, i32) {
    %c0_i32 = arith.constant 0 : i32
    %c0_i32_0 = arith.constant 0 : i32
    %c0_i32_1 = arith.constant 0 : i32
    return %arg0, %c0_i32, %c0_i32_0 : i32, i32, i32
  }
}

</mosaic_0001>

<bundles_post_ra>
// kernel: tpu_custom_call.1
= control target key start
LH: loop header
LB: loop body
LE: loop exit
PB: predicated region body
PF: predicated region fallthrough
CT: control target
= control target key end

     0   :  { %s2766_s0 = inlined_call_operand.hbm [shape: f32[2,8,32], index: 0, kind: input, shape index: {}]   ;;  %s2767_s1 = inlined_call_operand.vmem [shape: f32[32,96], index: 1, kind: input, shape index: {}]   ;;  %s2768_s2 = inlined_call_operand.vmem [shape: f32[1,96], index: 2, kind: input, shape index: {}]   ;;  %s2769_s3 = inlined_call_operand.vmem [shape: f32[32,32], index: 3, kind: input, shape index: {}]   ;;  %s2770_s4 = inlined_call_operand.vmem [shape: f32[1,32], index: 4, kind: input, shape index: {}]   ;;  %s2771_s5 = inlined_call_operand.vmem [shape: f32[32,64], index: 5, kind: input, shape index: {}]   ;;  %s2772_s6 = inlined_call_operand.hbm [shape: f32[1,64], index: 6, kind: input, shape index: {}]   ;;  %s2773_s7 = inlined_call_operand.vmem [shape: f32[64,32], index: 7, kind: input, shape index: {}]   ;;  %s2774_s8 = inlined_call_operand.hbm [shape: f32[1,32], index: 8, kind: input, shape index: {}]   ;;  %s2775_s9 = inlined_call_operand.hbm [shape: f32[1,32], index: 9, kind: input, shape index: {}]   ;;  %s2776_s10 = inlined_call_operand.vmem [shape: f32[1,32], index: 10, kind: input, shape index: {}]   ;;  %s2777_s11 = inlined_call_operand.vmem [shape: f32[1,32], index: 11, kind: input, shape index: {}]   ;;  %s2778_s12 = inlined_call_operand.vmem [shape: f32[1,32], index: 12, kind: input, shape index: {}]   ;;  %s2779_s13 = inlined_call_operand.vmem [shape: f32[4,8,8], index: 13, kind: input, shape index: {}]   ;;  %s2780_s14 = inlined_call_operand.hbm [shape: f32[2,8,32], index: 14, kind: output, shape index: {}]  }
   0x1   :  { %2788 = sst [smem:[#allocation17_spill]] %s2773_s7 }
   0x2   :  { %2789 = sst [smem:[#allocation18_spill]] %s2777_s11 }
   0x3   :  { %2790 = sst [smem:[#allocation19_spill]] %s2778_s12 }
   0x4   :  { %2791 = sst [smem:[#allocation20_spill]] %s2780_s14 }
   0x5   :  { %19 = vsyncpa [#allocation3], 0 }
   0x6   :  { %21 = vsyncpa [#allocation3 + $0x1], 0 }
   0x7   :  { %22 = vsyncpa [#allocation6], 0 }
   0x8   :  { %23 = vsyncpa [#allocation9], 0 }
   0x9   :  { %24 = vsyncpa [#allocation4], 0 }
   0xa   :  { %26 = vsyncpa [#allocation4 + $0x1], 0  ;;  %s2332_s29 = smov 0   ;;  %s2334_s30 = smov 0  }
   0xb   :  { %s2336_s15 = smov 0   ;;  %s2338_s16 = smov 0  }
   0xc LB: > { %2792 = sst [smem:[#allocation15_spill]] %s2221_s29  ;;  %s2353_s17 = sadd.s32 4294967295, %s2233_s16   ;;  %s2233_s16 = sphi %s2338_s16, %s2819_s16   ;;  %s2229_s15 = sphi %s2336_s15, %s2818_s15   ;;  %s2225_s30 = sphi %s2334_s30, %s2817_s30   ;;  %s2221_s29 = sphi %s2332_s29, %s2816_s29  }
   0xd   : > { %s1724_s18 = sadd.s32 4294967294, %s2233_s16   ;;  %p52_p0 = scmp.ne.s32.totalorder %s2225_s30, %s2221_s29 }
   0xe   : > { %p2784_p1 = scmp.eq.s32.totalorder %s2353_s17, 0  ;;  %p355_p3 = scmp.eq.s32.totalorder %s1724_s18, 1 }
   0xf   : > { %p1725_p5 = scmp.ge.s32.totalorder %s2233_s16, 1  ;;  %p362_p7 = scmp.lt.s32.totalorder %s2233_s16, 3 }
  0x10   : > { %p2362_p4 = por %p2784_p1, %p52_p0  ;;  %p2367_p6 = por %p355_p3, %p52_p0 }
  0x11   : > { %p2372_p8 = pnand %p1725_p5, %p362_p7  ;;  %s2235_s22 = smov [#allocation5]  }
  0x12   : > { %s2793_s19 = scalar_select %p2362_p4, 1, 0 }
  0x13   : > { %s2794_s20 = scalar_select %p2367_p6, 1, 0 }
  0x14   : > { %s2796_s21 = scalar_select %p2372_p8, 1, 0 }
  0x15   : > { %2795 = sst [smem:[#allocation16_spill]] %s2794_s20  ;;  %s390_s23 = sshll.u32 %s2235_s22, 4  ;;  %s391_s23 = int_to_ptr.vmem [resolvable:$true] %s390_s23 }
  0x16   : > { %p1947_p10 = pneg %p2372_p8  ;;  %s2236_s24 = smov [#allocation7]  }
  0x17   : > { %s404_s25 = sshll.u32 %s2236_s24, 4  ;;  %s2237_s27 = smov [#allocation8]   ;;  %s2385_s25 = int_to_ptr.vmem [resolvable:$true] %s404_s25 }
  0x18   : > { %p2381_p11 = pnand %p1947_p10, %p2784_p1  ;;  %s415_s28 = sshll.u32 %s2237_s27, 4  ;;  %s2387_s28 = int_to_ptr.vmem [resolvable:$true] %s415_s28 }
  0x19   : > { %s2045_s20 = scalar_lea.hbm %s2772_s6, 16 }
  0x1a   : > { %p2046_p12 = scmp.ne.s32.totalorder %s2772_s6, %s2045_s20  ;;  %p2397_p13 = pneg %p2381_p11 }
  0x1b   : > { %p2052_p5 = scmp.lt.u32.totalorder %s2045_s20, %s2772_s6 }
  0x1c   : > { %p2048_p0 = pnand %p2397_p13, %p2046_p12 }
  0x1e   : > { %p2049_p3 = pneg %p2048_p0 }
  0x20   : > { %p2054_p7 = pnand %p2052_p5, %p2049_p3 }
  0x22   : > { %2057 = shalt.err (!%p2054_p7)
}
  0x23   : > { %s2058_s18 = scalar_lea.vmem %s391_s23, 16  ;;  %s2065_s14 = scalar_lea.vmem %s391_s23, 32 }
  0x24   : > { %p2059_p10 = scmp.ne.s32.totalorder %s391_s23, %s2058_s18  ;;  %p2066_p2 = scmp.lt.s32.totalorder %s391_s23, %s391_s23 }
  0x25   : > { %p2067_p6 = scmp.lt.s32.totalorder %s2065_s14, %s2058_s18 }
  0x26   : > { %p2061_p9 = pnand %p2059_p10, %p2397_p13 }
  0x27   : > { %p2068_p4 = por %p2067_p6, %p2066_p2 }
  0x28   : > { %p2062_p1 = pneg %p2061_p9 }
  0x2a   : > { %p2069_p8 = pnand %p2068_p4, %p2062_p1 }
  0x2c   : > { %2072 = shalt.err (!%p2069_p8)
}
  0x2d   : > { %1950 = dma.hbm_to_vmem [thread:$0]  (!%p2381_p11), %s2772_s6, 16, %s391_s23, [#allocation6]  }
  0x2e   : > { %s2073_s27 = scalar_lea.hbm %s2774_s8, 16 }
  0x2f   : > { %p2074_p9 = scmp.ne.s32.totalorder %s2774_s8, %s2073_s27  ;;  %p2080_p1 = scmp.lt.u32.totalorder %s2073_s27, %s2774_s8 }
  0x31   : > { %p2076_p12 = pnand %p2074_p9, %p2397_p13 }
  0x33   : > { %p2077_p2 = pneg %p2076_p12 }
  0x35   : > { %p2082_p4 = pnand %p2080_p1, %p2077_p2 }
  0x37   : > { %2085 = shalt.err (!%p2082_p4)
}
  0x38   : > { %s2086_s23 = scalar_lea.vmem %s2385_s25, 16  ;;  %s2093_s7 = scalar_lea.vmem %s2385_s25, 32 }
  0x39   : > { %p2087_p6 = scmp.ne.s32.totalorder %s2385_s25, %s2086_s23  ;;  %p2094_p3 = scmp.lt.s32.totalorder %s2385_s25, %s2385_s25 }
  0x3a   : > { %p2095_p5 = scmp.lt.s32.totalorder %s2093_s7, %s2086_s23 }
  0x3b   : > { %p2089_p8 = pnand %p2087_p6, %p2397_p13 }
  0x3c   : > { %p2096_p7 = por %p2095_p5, %p2094_p3 }
  0x3d   : > { %p2090_p0 = pneg %p2089_p8 }
  0x3f   : > { %p2097_p10 = pnand %p2096_p7, %p2090_p0 }
  0x41   : > { %2100 = shalt.err (!%p2097_p10)
}
  0x42   : > { %1953 = dma.hbm_to_vmem [thread:$0]  (!%p2381_p11), %s2774_s8, 16, %s2385_s25, [#allocation6]  }
  0x43   : > { %s2101_s20 = scalar_lea.hbm %s2775_s9, 16 }
  0x44   : > { %p2102_p9 = scmp.ne.s32.totalorder %s2775_s9, %s2101_s20  ;;  %p2108_p1 = scmp.lt.u32.totalorder %s2101_s20, %s2775_s9 }
  0x46   : > { %p2104_p12 = pnand %p2102_p9, %p2397_p13 }
  0x48   : > { %p2105_p2 = pneg %p2104_p12 }
  0x4a   : > { %p2110_p4 = pnand %p2108_p1, %p2105_p2 }
  0x4c   : > { %2113 = shalt.err (!%p2110_p4)
}
  0x4d   : > { %s2114_s25 = scalar_lea.vmem %s2387_s28, 16  ;;  %s2121_s7 = scalar_lea.vmem %s2387_s28, 32 }
  0x4e   : > { %p2115_p6 = scmp.ne.s32.totalorder %s2387_s28, %s2114_s25  ;;  %p2122_p3 = scmp.lt.s32.totalorder %s2387_s28, %s2387_s28 }
  0x4f   : > { %p2123_p5 = scmp.lt.s32.totalorder %s2121_s7, %s2114_s25 }
  0x50   : > { %p2117_p8 = pnand %p2115_p6, %p2397_p13 }
  0x51   : > { %p2124_p7 = por %p2123_p5, %p2122_p3 }
  0x52   : > { %p2118_p0 = pneg %p2117_p8 }
  0x54   : > { %p2125_p10 = pnand %p2124_p7, %p2118_p0 }
  0x56   : > { %2128 = shalt.err (!%p2125_p10)
}
  0x57   : > { %1956 = dma.hbm_to_vmem [thread:$0]  (!%p2381_p11), %s2775_s9, 16, %s2387_s28, [#allocation9]  }
  0x58   : > { %s2462_s24 = sadd.s32 1, %s2233_s16   ;;  %s39_s22 = sadd.s32 1, %s2229_s15 }
  0x59   : > { %s36_s26 = ssub.s32 %s2233_s16, %s2462_s24  ;;  %p46_p9 = scmp.ne.s32.totalorder %s2229_s15, %s2225_s30 }
  0x5a   : > { %p37_p13 = scmp.eq.s32.totalorder %s36_s26, 0  ;;  %p47_p12 = scmp.eq.s32.totalorder %s2233_s16, 0 }
  0x5b   : > { %p1968_p2 = scmp.lt.s32.totalorder %s2233_s16, 2  ;;  %p2799_p4 = scmp.eq.s32.totalorder %s2353_s17, 1 }
  0x5c   : > { %s2472_s12 = scalar_select %p37_p13, %s2229_s15, %s39_s22  }
  0x5d   : > { %p48_p1 = por %p47_p12, %p46_p9  ;;  %p2476_p6 = por %p2799_p4, %p46_p9 }
  0x5e   : > { %s438_s27 = sand.u32 1, %s2229_s15   ;;  %s1731_s18 = sshll.u32 %s2233_s16, 7 }
  0x5f   : > { %s1730_s28 = sshll.u32 %s438_s27, 3  ;;  %s2485_s25 = scalar_lea.hbm %s2766_s0, %s1731_s18 }
  0x60   : > { %s442_s7 = scalar_lea.vmem [#allocation2], %s1730_s28  ;;  %p2487_p11 = pnand %p1968_p2, %p48_p1 }
  0x61   : > { %s449_s11 = sshll.u32 %s442_s7, 4  ;;  %s439_s26 = scalar_lea.sflag [#allocation3], %s438_s27  ;;  %s2491_s11 = int_to_ptr.vmem [resolvable:$true] %s449_s11 }
  0x62   : > { %s2129_s22 = scalar_lea.hbm %s2485_s25, 128  ;;  %p2131_p0 = pneg %p2487_p11 }
  0x63   : > { %p2130_p8 = scmp.ne.s32.totalorder %s2485_s25, %s2129_s22  ;;  %s2134_s14 = scalar_lea.hbm %s2766_s0, 256 }
  0x64   : > { %p2135_p7 = scmp.lt.u32.totalorder %s2485_s25, %s2766_s0  ;;  %p2136_p10 = scmp.lt.u32.totalorder %s2134_s14, %s2129_s22 }
  0x65   : > { %p2132_p3 = pnand %p2131_p0, %p2130_p8  ;;  %p2138_p9 = scmp.lt.u32.totalorder %s2129_s22, %s2485_s25 }
  0x66   : > { %p2137_p13 = por %p2136_p10, %p2135_p7 }
  0x67   : > { %p2133_p5 = pneg %p2132_p3 }
  0x68   : > { %p2139_p12 = por %p2138_p9, %p2137_p13 }
  0x6a   : > { %p2140_p2 = pnand %p2139_p12, %p2133_p5 }
  0x6c   : > { %2143 = shalt.err (!%p2140_p2)
}
  0x6d   : > { %s2144_s27 = scalar_lea.vmem %s2491_s11, 128  ;;  %s2238_s18 = smov [#allocation2]  }
  0x6e   : > { %p2145_p1 = scmp.ne.s32.totalorder %s2491_s11, %s2144_s27  ;;  %s2149_s28 = sshll.u32 %s2238_s18, 4  ;;  %s2150_s28 = int_to_ptr.vmem [resolvable:$false] %s2149_s28 }
  0x6f   : > { %s2151_s23 = scalar_lea.vmem %s2150_s28, 256  ;;  %p2152_p3 = scmp.lt.s32.totalorder %s2491_s11, %s2150_s28 }
  0x70   : > { %p2147_p4 = pnand %p2145_p1, %p2131_p0  ;;  %p2153_p7 = scmp.lt.s32.totalorder %s2151_s23, %s2144_s27 }
  0x72   : > { %p2148_p8 = pneg %p2147_p4  ;;  %p2154_p10 = por %p2153_p7, %p2152_p3 }
  0x74   : > { %p2155_p13 = pnand %p2154_p10, %p2148_p8 }
  0x76   : > { %2158 = shalt.err (!%p2155_p13)
}
  0x77   : > { %1960 = dma.hbm_to_vmem [thread:$0]  (!%p2487_p11), %s2485_s25, 128, %s2491_s11, %s439_s26  }
  0x78   : > { %p2802_p5 = scmp.ne.s32.totalorder %s2796_s21, 0 }
  0x79   : > { %s2521_s22 = sand.u32 (!%p2802_p5), 1, %s2225_s30   ;;  %p2803_p0 = scmp.ne.s32.totalorder (!%p2802_p5), %s2793_s19, 0 }
  0x7a   : > { %458 = sbr.rel (%p2802_p5) target bundleno = 2631 (0xa47), region = 76  ;;  %s1733_s14 = sshll.u32 (!%p2802_p5), %s2521_s22, 3 }
  0x7b   : > { %s461_s7 = scalar_lea.sflag (!%p2802_p5), [#allocation3], %s2521_s22  ;;  %s464_s27 = scalar_lea.vmem (!%p2802_p5), [#allocation2], %s1733_s14 }
  0x81   : > { %2204 = dma.done.wait (%p2803_p0), %s461_s7, 128  }
  0x82   : > { %2206 = vsyncadd (%p2803_p0), %s461_s7, 4294967168  ;;  %p2804_p11 = scmp.eq.s32.totalorder %s2353_s17, 0 }
  0x84   : > { %2208 = dma.done.wait (%p2804_p11), [#allocation6], 32   ;;  %p2805_p9 = pmov %p2804_p11 }
  0x86   : > { %2210 = vsyncadd (%p2805_p9), [#allocation6], 4294967264  ;;  %p2806_p12 = pmov %p2805_p9 }
  0x87   : > { %p2807_p2 = pmov %p2805_p9 }
  0x88   : > { %2212 = dma.done.wait (%p2806_p12), [#allocation9], 16  }
  0x89   : > { %2214 = vsyncadd (%p2807_p2), [#allocation9], 4294967280  ;;  %vm524_vm0 = vcmask 261120   ;;  %v2539_v0 = vld [vmem:[%s464_s27] sm:$0xff]  ;;  %v555_v9 = vld [vmem:[%s2767_s1 + $0x10] sm:$0xff]  ;;  %v2239_v10 = vmov 0.0|0.0  }
  0x8a   : > { %v525_v1 = vsel %vm524_vm0, %v2539_v0, 0.0  ;;  %v553_v7 = vld [vmem:[%s2767_s1] sm:$0xff]  ;;  %v554_v8 = vld [vmem:[%s2767_s1 + $0x8] sm:$0xff]  ;;  %1901 = vmatprep.subr.bf16.mxu1 %v2239_v10  ;;  %v556_v12 = vld [vmem:[%s2767_s1 + $0x18] sm:$0xff]  ;;  %vm2240_vm1 = vmmov 0   ;;  %v2241_v13 = vmov 0.0  }
  0x8b   : > { %526 = vadd.xlane.f32.xlu0 %v525_v1  ;;  %v1902_v11 = vpack.c.bf16 %v554_v8, %v553_v7  ;;  %1817 = vmatprep.mubr.msk.f32.mxu1 %vm2240_vm1, %v2241_v13  ;;  %v1905_v14 = vpack.c.bf16 %v556_v12, %v555_v9  ;;  %v1738_v19 = vld [vmem:[#allocation8] ss:$0 sm:$0xff]  ;;  %v1739_v21 = vld [vmem:[%s2776_s10] ss:$0 sm:$0xff]  ;;  %s2242_s21 = smov 104   ;;  %s2243_s25 = smov 120  }
  0x8c   : > { %1830 = vmatprep.subr.mxu0 %v2241_v13  ;;  %1832 = vmatprep.mubr.msk.f32.mxu0 %vm2240_vm1, %v2241_v13  ;;  %v1740_v24 = vld [vmem:[%s2768_s2] ss:$0 sm:$0xff]  ;;  %s2244_s11 = smov 96   ;;  %s2245_s29 = smov 72   ;;  %vm641_vm2 = vcmask 64512   ;;  %v1745_v39 = vld [vmem:[%s2779_s13 + $0x8] sm:$0xff] }
  0x8d   : > { %1903 = vmatpush3.bf16.msra.mxu1 %v1902_v11  ;;  %s2246_s26 = smov 80   ;;  %s2247_s18 = smov 48   ;;  %v637_v35 = vld [vmem:[%s2779_s13] sm:$0xff]  ;;  %v1749_v45 = vld [vmem:[%s2779_s13 + $0x10] sm:$0xff]  ;;  %v1753_v50 = vld [vmem:[%s2779_s13 + $0x18] sm:$0xff]  ;;  %vm1317_vm3 = vcmask 130048  }
  0x8e   : > { %1904 = vmatprep.subr.bf16.mxu1 %v2239_v10  ;;  %s2248_s28 = smov 56   ;;  %s2252_s23 = smov 88   ;;  %vm1319_vm4 = vcmask 195584   ;;  %vm1535_vm5 = vcmask 523264  }
  0x8f   : > { %s2808_s27 = sld [smem:[#allocation17_spill]]  ;;  %s1766_s19 = sshll.u32 %s2353_s17, 7 }
  0x91   : > { %1906 = vmatpush3.bf16.msra.mxu1 %v1905_v14 }
  0x92   : > { %1820 = vmatprep.subr.mxu1 %v2241_v13 }
 0x118   : > { %v527_v2 = vpop.xlane.xlu0 %526 }
 0x119   : > { %v529_v3 = vmul.f32 0.03125, %v527_v2 }
 0x11b   : > { %v530_v4 = vsub.f32 %v2539_v0, %v529_v3 }
 0x11d   : > { %v531_v5 = vmul.f32 %v530_v4, %v530_v4 }
 0x11f   : > { %v532_v6 = vsel %vm524_vm0, %v531_v5, 0.0 }
 0x120   : > { %533 = vadd.xlane.f32.xlu0 %v532_v6 }
 0x1ad   : > { %v534_v15 = vpop.xlane.xlu0 %533 }
 0x1ae   : > { %v535_v16 = vmul.f32 0.03125, %v534_v15 }
 0x1b0   : > { %v536_v17 = vadd.f32 1e-05, %v535_v16 }
 0x1b2   : > { %2025 = vrsqrt.f32 %v536_v17 }
 0x1bc   : > { %v2026_v18 = vpop.eup %2025 }
 0x1bd   : > { %v538_v20 = vmul.f32 %v2026_v18, %v530_v4 }
 0x1bf   : > { %v545_v22 = vmul.f32 %v1738_v19, %v538_v20 }
 0x1c1   : > { %v552_v23 = vadd.f32 %v1739_v21, %v545_v22 }
 0x1c3   : > { %1818 = vmatmul.mubr.msk.f32.vlgmr.msra.gmra.mrb[0].mxu1 %vm524_vm0, %v552_v23 }
 0x1c4   : > { %1822 = vmatprep.mubr.msk.f32.mxu1 %vm2240_vm1, %v2241_v13 }
 0x296   : > { %v633_v25 = vpop.f32.mrb[0].mxu1 }
 0x297   : > { %v2574_v26 = vadd.f32 %v1740_v24, %v633_v25  ;;  %v1819_v27 = vpop.f32.mrb[1].mxu1 }
 0x299   : > { %805 = vrot.lane.b32.xlu0 %v2574_v26, %s2242_s21  ;;  %639 = vrot.lane.b32.xlu1 %v2574_v26, %s2243_s25  ;;  %s2809_s25 = sld [smem:[#allocation18_spill]]  ;;  %s520_s21 = scalar_lea.vmem [#allocation10], %s1733_s14 }
 0x29a   : > { %s2256_s14 = smov [#allocation10]  }
 0x29d   : > { %807 = vrot.lane.b32.xlu1 %v2574_v26, %s2244_s11 }
 0x2a1   : > { %974 = vrot.lane.b32.xlu1 %v2574_v26, %s2245_s29 }
 0x2a5   : > { %972 = vrot.lane.b32.xlu1 %v2574_v26, %s2246_s26  ;;  %s2249_s26 = smov 112  }
 0x2a9   : > { %1141 = vrot.lane.b32.xlu1 %v2574_v26, %s2247_s18  ;;  %s2250_s18 = smov 64  }
 0x2ad   : > { %1139 = vrot.lane.b32.xlu1 %v2574_v26, %s2248_s28  ;;  %s2251_s28 = smov 40  }
 0x30b   : > { %v640_v28 = vpop.permute.xlu1 %639  ;;  %v806_v30 = vpop.permute.xlu0 %805 }
 0x30c   : > { %1821 = vmatpush3.xpose.msk.msra.mxu1 %vm641_vm2, %v640_v28 }
 0x30d   : > { %1825 = vmatprep.subr.mxu1 %v2241_v13 }
 0x30f   : > { %1823 = vmatmul.mubr.msk.f32.vlgmr.msra.gmra.mrb[2].mxu1 %vm641_vm2, %v2574_v26  ;;  %v808_v29 = vpop.permute.xlu1 %807 }
 0x310   : > { %1831 = vmatpush3.xpose.msk.msra.mxu0 %vm641_vm2, %v808_v29  ;;  %1827 = vmatprep.mubr.msk.f32.mxu1 %vm2240_vm1, %v2241_v13 }
 0x311   : > { %1840 = vmatprep.subr.mxu0 %v2241_v13 }
 0x313   : > { %1833 = vmatmul.mubr.msk.f32.vlgmr.msra.gmra.mrb[0].mxu0 %vm641_vm2, %v806_v30  ;;  %v975_v31 = vpop.permute.xlu1 %974  ;;  %v1321_v30 = vld [vmem:[%s2769_s3] sm:$0xff] }
 0x314   : > { %1841 = vmatpush3.xpose.msk.msra.mxu0 %vm641_vm2, %v975_v31  ;;  %1842 = vmatprep.mubr.msk.f32.mxu0 %vm2240_vm1, %v2241_v13  ;;  %v1322_v31 = vld [vmem:[%s2769_s3 + $0x8] sm:$0xff] }
 0x315   : > { %1850 = vmatprep.subr.mxu0 %v2241_v13 }
 0x317   : > { %v973_v32 = vpop.permute.xlu1 %972 }
 0x318   : > { %1843 = vmatmul.mubr.msk.f32.vlgmr.msra.gmra.mrb[2].mxu0 %vm641_vm2, %v973_v32  ;;  %v1908_v32 = vpack.c.bf16 %v1322_v31, %v1321_v30 }
 0x319   : > { %1852 = vmatprep.mubr.msk.f32.mxu0 %vm2240_vm1, %v2241_v13 }
 0x31b   : > { %v1142_v33 = vpop.permute.xlu1 %1141 }
 0x31c   : > { %1851 = vmatpush3.xpose.msk.msra.mxu0 %vm641_vm2, %v1142_v33 }
 0x31d   : > { %1907 = vmatprep.subr.bf16.mxu0 %v2239_v10 }
 0x31f   : > { %v1140_v34 = vpop.permute.xlu1 %1139 }
 0x320   : > { %1853 = vmatmul.mubr.msk.f32.vlgmr.msra.gmra.mrb[4].mxu0 %vm641_vm2, %v1140_v34 }
 0x321   : > { %1868 = vmatprep.mubr.msk.f32.mxu0 %vm2240_vm1, %v2241_v13  ;;  %1909 = vmatpush3.bf16.msra.mxu0 %v1908_v32 }
 0x322   : > { %1910 = vmatprep.subr.bf16.mxu0 %v2239_v10 }
 0x3e2   : > { %v712_v36 = vpop.f32.mrb[2].mxu1 }
 0x3e3   : > { %v713_v37 = vadd.f32 %v712_v36, %v637_v35  ;;  %v1824_v38 = vpop.f32.mrb[3].mxu1  ;;  %v1323_v35 = vld [vmem:[%s2769_s3 + $0x10] sm:$0xff]  ;;  %v1324_v36 = vld [vmem:[%s2769_s3 + $0x18] sm:$0xff] }
 0x3e5   : > { %v716_v40 = vsel %vm641_vm2, %v713_v37, -inf }
 0x3e6   : > { %v879_v41 = vpop.f32.mrb[0].mxu0  ;;  %717 = vmax.xlane.f32.xlu1 %v716_v40 }
 0x3e7   : > { %v880_v42 = vadd.f32 %v1745_v39, %v879_v41  ;;  %v1834_v43 = vpop.f32.mrb[1].mxu0 }
 0x3e9   : > { %v883_v44 = vsel %vm641_vm2, %v880_v42, -inf }
 0x3ea   : > { %884 = vmax.xlane.f32.xlu0 %v883_v44 }
 0x3eb   : > { %v1046_v46 = vpop.f32.mrb[2].mxu0 }
 0x3ec   : > { %v1047_v47 = vadd.f32 %v1749_v45, %v1046_v46  ;;  %v1844_v48 = vpop.f32.mrb[3].mxu0 }
 0x3ee   : > { %v1050_v49 = vsel %vm641_vm2, %v1047_v47, -inf }
 0x3ef   : > { %1051 = vmax.xlane.f32.xlu1 %v1050_v49 }
 0x3f3   : > { %v1213_v51 = vpop.f32.mrb[4].mxu0 }
 0x3f4   : > { %v1214_v52 = vadd.f32 %v1753_v50, %v1213_v51  ;;  %v1854_v53 = vpop.f32.mrb[5].mxu0  ;;  %v1757_v50 = vld [vmem:[%s2770_s4] ss:$0 sm:$0xff] }
 0x3f6   : > { %v1217_v54 = vsel %vm641_vm2, %v1214_v52, -inf }
 0x3f7   : > { %1218 = vmax.xlane.f32.xlu0 %v1217_v54 }
 0x400   : > { %727 = vrot.lane.b32.xlu1 %v2574_v26, %s2249_s26  ;;  %s2810_s26 = sld [smem:[#allocation19_spill]] }
 0x473   : > { %v718_v55 = vpop.xlane.xlu1 %717 }
 0x474   : > { %v719_v56 = vsub.f32 %v713_v37, %v718_v55  ;;  %v1911_v37 = vpack.c.bf16 %v1324_v36, %v1323_v35 }
 0x476   : > { %v720_v57 = vmul.f32 1.442695, %v719_v56  ;;  %1912 = vmatpush3.bf16.msra.mxu0 %v1911_v37 }
 0x477   : > { %v885_v58 = vpop.xlane.xlu0 %884  ;;  %1919 = vmatprep.subr.bf16.mxu0 %v2239_v10 }
 0x478   : > { %2027 = vpow2.f32 %v720_v57  ;;  %v886_v59 = vsub.f32 %v880_v42, %v885_v58 }
 0x47a   : > { %v887_v60 = vmul.f32 1.442695, %v886_v59 }
 0x47c   : > { %2029 = vpow2.f32 %v887_v60  ;;  %v1052_v61 = vpop.xlane.xlu1 %1051 }
 0x47d   : > { %v1053_v62 = vsub.f32 %v1047_v47, %v1052_v61  ;;  %v1436_v61 = vld [vmem:[%s2771_s5 + $0x8] sm:$0xff] }
 0x47f   : > { %v1054_v63 = vmul.f32 1.442695, %v1053_v62 }
 0x480   : > { %v728_v1 = vpop.permute.xlu1 %727 }
 0x481   : > { %2031 = vpow2.f32 %v1054_v63  ;;  %1826 = vmatpush3.msra.mxu1 %v728_v1  ;;  %v1438_v63 = vld [vmem:[%s2771_s5 + $0x18] sm:$0xff] }
 0x482   : > { %v2028_v2 = vpop.eup %2027  ;;  %1835 = vmatprep.subr.mxu1 %v2241_v13 }
 0x483   : > { %v722_v3 = vsel %vm641_vm2, %v2028_v2, 0.0 }
 0x484   : > { %v1219_v4 = vpop.xlane.xlu0 %1218  ;;  %723 = vadd.xlane.f32.xlu1 %v722_v3  ;;  %v1521_v3 = vld [vmem:[%s2808_s27 + $0x8] sm:$0xff] }
 0x485   : > { %v1220_v5 = vsub.f32 %v1214_v52, %v1219_v4  ;;  %v1522_v4 = vld [vmem:[%s2808_s27 + $0x10] sm:$0xff] }
 0x486   : > { %v2030_v6 = vpop.eup %2029 }
 0x487   : > { %v1221_v7 = vmul.f32 1.442695, %v1220_v5  ;;  %v889_v8 = vsel %vm641_vm2, %v2030_v6, 0.0 }
 0x488   : > { %890 = vadd.xlane.f32.xlu0 %v889_v8  ;;  %v1524_v8 = vld [vmem:[%s2808_s27 + $0x20] sm:$0xff] }
 0x489   : > { %2033 = vpow2.f32 %v1221_v7 }
 0x48b   : > { %v2032_v9 = vpop.eup %2031 }
 0x48c   : > { %v1056_v11 = vsel %vm641_vm2, %v2032_v9, 0.0 }
 0x48d   : > { %1057 = vadd.xlane.f32.xlu1 %v1056_v11 }
 0x493   : > { %v2034_v12 = vpop.eup %2033 }
 0x494   : > { %v1223_v14 = vsel %vm641_vm2, %v2034_v12, 0.0 }
 0x495   : > { %1224 = vadd.xlane.f32.xlu0 %v1223_v14 }
 0x49e   : > { %1061 = vrot.lane.b32.xlu1 %v2574_v26, %s2250_s18  ;;  %s2253_s18 = smov 8  }
 0x4a2   : > { %1228 = vrot.lane.b32.xlu1 %v2574_v26, %s2251_s28  ;;  %s2254_s28 = smov 16  }
 0x4ab   : > { %894 = vrot.lane.b32.xlu0 %v2574_v26, %s2252_s23  ;;  %s2255_s23 = smov 24  }
 0x511   : > { %v724_v15 = vpop.xlane.xlu1 %723 }
 0x512   : > { %2035 = vrcp.f32 %v724_v15 }
 0x515   : > { %v891_v16 = vpop.xlane.xlu0 %890 }
 0x516   : > { %2037 = vrcp.f32 %v891_v16 }
 0x51a   : > { %v1058_v17 = vpop.xlane.xlu1 %1057 }
 0x51b   : > { %2039 = vrcp.f32 %v1058_v17  ;;  %v1759_v17 = vld [vmem:[%s2809_s25] ss:$0 sm:$0xff]  ;;  %s1625_s25 = sshll.u32 %s520_s21, 4  ;;  %s2723_s25 = int_to_ptr.vmem [resolvable:$true] %s1625_s25 }
 0x51c   : > { %v2036_v18 = vpop.eup %2035  ;;  %s2159_s17 = scalar_lea.vmem %s2723_s25, 128 }
 0x51d   : > { %v726_v19 = vmul.f32 %v2036_v18, %v2028_v2  ;;  %v1520_v2 = vld [vmem:[%s2808_s27] sm:$0xff]  ;;  %p2160_p1 = scmp.ne.s32.totalorder %s2723_s25, %s2159_s17 }
 0x51e   : > { %v1062_v23 = vpop.permute.xlu1 %1061  ;;  %v1920_v5 = vpack.c.bf16 %v1521_v3, %v1520_v2 }
 0x51f   : > { %1828 = vmatmul.mubr.msk.f32.vlgmr.msra.gmra.mrb[4].mxu1 %vm641_vm2, %v726_v19  ;;  %v1760_v19 = vld [vmem:[%s2810_s26] ss:$0 sm:$0xff]  ;;  %s2811_s26 = sld [smem:[#allocation20_spill]]  ;;  %p2161_p4 = pnand %p2160_p1, %p2476_p6 }
 0x520   : > { %1837 = vmatprep.mubr.msk.f32.mxu1 %vm2240_vm1, %v2241_v13  ;;  %v2038_v21 = vpop.eup %2037 }
 0x521   : > { %v893_v22 = vmul.f32 %v2038_v21, %v2030_v6  ;;  %v1523_v6 = vld [vmem:[%s2808_s27 + $0x18] sm:$0xff]  ;;  %p2162_p8 = pneg %p2161_p4 }
 0x522   : > { %v1225_v20 = vpop.xlane.xlu0 %1224  ;;  %v1229_v27 = vpop.permute.xlu1 %1228  ;;  %v1923_v7 = vpack.c.bf16 %v1523_v6, %v1522_v4 }
 0x523   : > { %2041 = vrcp.f32 %v1225_v20 }
 0x525   : > { %v2040_v25 = vpop.eup %2039 }
 0x526   : > { %v895_v24 = vpop.permute.xlu0 %894  ;;  %v1060_v26 = vmul.f32 %v2040_v25, %v2032_v9  ;;  %v1525_v9 = vld [vmem:[%s2808_s27 + $0x28] sm:$0xff] }
 0x527   : > { %1836 = vmatpush3.msra.mxu1 %v895_v24  ;;  %v1926_v11 = vpack.c.bf16 %v1525_v9, %v1524_v8  ;;  %v1761_v24 = vld [vmem:[#allocation5] ss:$0 sm:$0xff] }
 0x528   : > { %1838 = vmatmul.mubr.msk.f32.vlgmr.msra.gmra.mrb[6].mxu1 %vm641_vm2, %v893_v22  ;;  %1845 = vmatprep.subr.mxu1 %v2241_v13  ;;  %v1527_v22 = vld [vmem:[%s2808_s27 + $0x38] sm:$0xff] }
 0x529   : > { %1846 = vmatpush3.msra.mxu1 %v1062_v23  ;;  %1847 = vmatprep.mubr.msk.f32.mxu1 %vm2240_vm1, %v2241_v13 }
 0x52a   : > { %1855 = vmatprep.subr.mxu1 %v2241_v13 }
 0x52c   : > { %1848 = vmatmul.mubr.msk.f32.vlgmr.msra.gmra.mrb[8].mxu1 %vm641_vm2, %v1060_v26 }
 0x52d   : > { %v2042_v28 = vpop.eup %2041  ;;  %1856 = vmatpush3.msra.mxu1 %v1229_v27  ;;  %1857 = vmatprep.mubr.msk.f32.mxu1 %vm2240_vm1, %v2241_v13 }
 0x52e   : > { %v1227_v29 = vmul.f32 %v2042_v28, %v2034_v12  ;;  %1913 = vmatprep.subr.bf16.mxu1 %v2239_v10 }
 0x530   : > { %1858 = vmatmul.mubr.msk.f32.vlgmr.msra.gmra.mrb[10].mxu1 %vm641_vm2, %v1227_v29  ;;  %v1763_v29 = vld [vmem:[#allocation7] ss:$0 sm:$0xff] }
 0x531   : > { %1879 = vmatprep.mubr.msk.f32.mxu1 %vm2240_vm1, %v2241_v13 }
 0x5f2   : > { %v799_v33 = vpop.f32.mrb[4].mxu1 }
 0x5f3   : > { %v1829_v34 = vpop.f32.mrb[5].mxu1 }
 0x5fb   : > { %v966_v38 = vpop.f32.mrb[6].mxu1 }
 0x5fc   : > { %1305 = vrot.lane.b32.xlu0 %v966_v38, %s2253_s18  ;;  %v1839_v39 = vpop.f32.mrb[7].mxu1  ;;  %s2721_s18 = scalar_lea.hbm %s2811_s26, %s1766_s19 }
 0x5ff   : > { %v1133_v40 = vpop.f32.mrb[8].mxu1 }
 0x600   : > { %1309 = vrot.lane.b32.xlu1 %v1133_v40, %s2254_s28  ;;  %v1849_v41 = vpop.f32.mrb[9].mxu1  ;;  %s1612_s28 = scalar_lea.sflag [#allocation4], %s2521_s22 }
 0x603   : > { %v1300_v42 = vpop.f32.mrb[10].mxu1 }
 0x604   : > { %1313 = vrot.lane.b32.xlu0 %v1300_v42, %s2255_s23  ;;  %v1859_v43 = vpop.f32.mrb[11].mxu1  ;;  %s2163_s23 = sshll.u32 %s2256_s14, 4  ;;  %s2164_s23 = int_to_ptr.vmem [resolvable:$false] %s2163_s23 }
 0x605   : > { %s2165_s7 = scalar_lea.vmem %s2164_s23, 256  ;;  %p2166_p3 = scmp.lt.s32.totalorder %s2723_s25, %s2164_s23 }
 0x606   : > { %p2167_p7 = scmp.lt.s32.totalorder %s2165_s7, %s2159_s17 }
 0x608   : > { %p2168_p10 = por %p2167_p7, %p2166_p3 }
 0x60a   : > { %p2169_p13 = pnand %p2168_p10, %p2162_p8 }
 0x66e   : > { %v1306_v44 = vpop.permute.xlu0 %1305 }
 0x66f   : > { %v1316_v46 = vsel %vm641_vm2, %v799_v33, %v1306_v44 }
 0x672   : > { %v1310_v45 = vpop.permute.xlu1 %1309 }
 0x673   : > { %v1318_v47 = vsel %vm1317_vm3, %v1316_v46, %v1310_v45 }
 0x676   : > { %v1314_v48 = vpop.permute.xlu0 %1313 }
 0x677   : > { %v1320_v49 = vsel %vm1319_vm4, %v1318_v47, %v1314_v48 }
 0x678   : > { %1869 = vmatmul.mubr.msk.f32.vlgmr.msra.gmra.mrb[6].mxu0 %vm524_vm0, %v1320_v49 }
 0x679   : > { %1898 = vmatprep.mubr.msk.f32.mxu0 %vm2240_vm1, %v2241_v13  ;;  %v1435_v13 = vld [vmem:[%s2771_s5] sm:$0xff]  ;;  %1921 = vmatpush3.bf16.msra.mxu0 %v1920_v5 }
 0x67a   : > { %v1914_v62 = vpack.c.bf16 %v1436_v61, %v1435_v13  ;;  %1922 = vmatprep.subr.bf16.mxu0 %v2239_v10 }
 0x67c   : > { %1915 = vmatpush3.bf16.msra.mxu1 %v1914_v62 }
 0x67d   : > { %1916 = vmatprep.subr.bf16.mxu1 %v2239_v10  ;;  %1924 = vmatpush3.bf16.msra.mxu0 %v1923_v7 }
 0x67e   : > { %1925 = vmatprep.subr.bf16.mxu0 %v2239_v10 }
 0x681   : > { %1927 = vmatpush3.bf16.msra.mxu0 %v1926_v11 }
 0x682   : > { %1928 = vmatprep.subr.bf16.mxu0 %v2239_v10  ;;  %v1526_v10 = vld [vmem:[%s2808_s27 + $0x30] sm:$0xff] }
 0x683   : > { %v1929_v23 = vpack.c.bf16 %v1527_v22, %v1526_v10 }
 0x685   : > { %1930 = vmatpush3.bf16.msra.mxu0 %v1929_v23 }
 0x74b   : > { %v1401_v51 = vpop.f32.mrb[6].mxu0 }
 0x74c   : > { %v1402_v52 = vadd.f32 %v1757_v50, %v1401_v51  ;;  %v1870_v53 = vpop.f32.mrb[7].mxu0 }
 0x74e   : > { %v1405_v54 = vadd.f32 %v1402_v52, %v2539_v0  ;;  %v1437_v0 = vld [vmem:[%s2771_s5 + $0x10] sm:$0xff] }
 0x74f   : > { %v1917_v1 = vpack.c.bf16 %v1438_v63, %v1437_v0 }
 0x750   : > { %v1408_v55 = vsel %vm524_vm0, %v1405_v54, 0.0 }
 0x751   : > { %1409 = vadd.xlane.f32.xlu1 %v1408_v55  ;;  %1918 = vmatpush3.bf16.msra.mxu1 %v1917_v1 }
 0x7de   : > { %v1410_v56 = vpop.xlane.xlu1 %1409 }
 0x7df   : > { %v1411_v57 = vmul.f32 0.03125, %v1410_v56 }
 0x7e1   : > { %v1412_v58 = vsub.f32 %v1405_v54, %v1411_v57 }
 0x7e3   : > { %v1413_v59 = vmul.f32 %v1412_v58, %v1412_v58 }
 0x7e5   : > { %v1414_v60 = vsel %vm524_vm0, %v1413_v59, 0.0 }
 0x7e6   : > { %1415 = vadd.xlane.f32.xlu0 %v1414_v60 }
 0x873   : > { %v1416_v12 = vpop.xlane.xlu0 %1415 }
 0x874   : > { %v1417_v14 = vmul.f32 0.03125, %v1416_v12 }
 0x876   : > { %v1418_v15 = vadd.f32 1e-05, %v1417_v14 }
 0x878   : > { %2043 = vrsqrt.f32 %v1418_v15 }
 0x882   : > { %v2044_v16 = vpop.eup %2043 }
 0x883   : > { %v1420_v18 = vmul.f32 %v2044_v16, %v1412_v58 }
 0x885   : > { %v1427_v20 = vmul.f32 %v1759_v17, %v1420_v18 }
 0x887   : > { %v1434_v21 = vadd.f32 %v1760_v19, %v1427_v20 }
 0x889   : > { %1880 = vmatmul.mubr.msk.f32.vlgmr.msra.gmra.mrb[12].mxu1 %vm524_vm0, %v1434_v21 }
 0x95c   : > { %v1515_v25 = vpop.f32.mrb[12].mxu1 }
 0x95d   : > { %v1516_v26 = vadd.f32 %v1761_v24, %v1515_v25  ;;  %v1881_v27 = vpop.f32.mrb[13].mxu1 }
 0x95f   : > { %v1519_v28 = vmax.f32 %v1516_v26, 0.0 }
 0x961   : > { %1899 = vmatmul.mubr.msk.f32.vlgmr.msra.gmra.mrb[8].mxu0 %vm1535_vm5, %v1519_v28 }
 0xa34   : > { %v1605_v30 = vpop.f32.mrb[8].mxu0 }
 0xa35   : > { %v1606_v31 = vadd.f32 %v1763_v29, %v1605_v30  ;;  %v1900_v32 = vpop.f32.mrb[9].mxu0 }
 0xa37   : > { %v1609_v33 = vadd.f32 %v1606_v31, %v1405_v54 }
 0xa39   : > { %1610 = vst.msk [vmem:[%s520_s21] sm:$0xff] %vm524_vm0, %v1609_v33 }
 0xa3a   : > { %2172 = shalt.err (!%p2169_p13)
}
 0xa3b   : > { %s2173_s22 = scalar_lea.hbm %s2721_s18, 128  ;;  %s2177_s11 = scalar_lea.hbm %s2811_s26, 256 }
 0xa3c   : > { %p2174_p5 = scmp.ne.s32.totalorder %s2721_s18, %s2173_s22  ;;  %p2178_p9 = scmp.lt.u32.totalorder %s2721_s18, %s2811_s26 }
 0xa3d   : > { %p2179_p12 = scmp.lt.u32.totalorder %s2177_s11, %s2173_s22  ;;  %p2181_p1 = scmp.lt.u32.totalorder %s2173_s22, %s2721_s18 }
 0xa3e   : > { %p2175_p0 = pnand %p2174_p5, %p2476_p6 }
 0xa3f   : > { %p2180_p2 = por %p2179_p12, %p2178_p9 }
 0xa40   : > { %p2176_p11 = pneg %p2175_p0 }
 0xa41   : > { %p2182_p4 = por %p2181_p1, %p2180_p2 }
 0xa43   : > { %p2183_p8 = pnand %p2182_p4, %p2176_p11 }
 0xa45   : > { %2186 = shalt.err (!%p2183_p8)
}
 0xa46   : > { %1945 = dma.vmem_to_hbm [thread:$0]  (%p2476_p6), %s2723_s25, 128, %s2721_s18, %s1612_s28  }
 0xa47 PF: > { %s2812_s17 = sld [smem:[#allocation15_spill]]  ;;  %s2813_s23 = sld [smem:[#allocation16_spill]] }
 0xa48   : > { %p2815_p7 = scmp.ge.s32.totalorder %s2233_s16, 2 }
 0xa4d   : > { %s1637_s7 = sand.u32 1, %s2812_s17   ;;  %p2814_p3 = scmp.ne.s32.totalorder %s2813_s23, 0 }
 0xa4e   : > { %s1638_s19 = scalar_lea.sflag [#allocation4], %s1637_s7 }
 0xa4f   : > { %p1962_p10 = pnand %p2815_p7, %p2814_p3 }
 0xa51   : > { %2216 = dma.done.wait (!%p1962_p10), %s1638_s19, 128  }
 0xa52   : > { %2218 = vsyncadd (!%p1962_p10), %s1638_s19, 4294967168  ;;  %p29_p13 = scmp.ge.s32.totalorder %s2462_s24, 4   ;;  %s2816_s29 = smov %s2225_s30 }
 0xa53   : > { %s2817_s30 = smov %s2229_s15  ;;  %s2818_s15 = smov %s2472_s12 }
 0xa54   : > { %s2819_s16 = smov %s2462_s24  ;;  %31 = sbr.rel (!%p29_p13) target bundleno = 12 (0xc), region = 136 }
 0xa5b   :  { %1643 = vsyncpa [#allocation3], 1 }
 0xa5c   :  { %1645 = vsyncpa [#allocation3 + $0x1], 1 }
 0xa5d   :  { %1646 = vsyncpa [#allocation6], 1 }
 0xa5e   :  { %1647 = vsyncpa [#allocation9], 1 }
 0xa5f   :  { %1648 = vsyncpa [#allocation4], 1 }
 0xa60   :  { %1650 = vsyncpa [#allocation4 + $0x1], 1 }

</bundles_post_ra>
